<compile_context>
chip_gen: v7x
topology: tpu7x:2x2x1
jax: 0.10.0
libtpu: 0.0.40
codegen_flags: <defaults>
</compile_context>

<pallas_src>
from functools import partial

import jax
import jax.numpy as jnp
from jax.experimental import pallas as pl
from jax.experimental.pallas import tpu as pltpu


def _ppc_kernel(logits_ref, target_ref, out_ref, total_ref, count_ref,
                *, n_rows, ignore_label):
    # logits_ref: (TILE_N, C) native dtype in VMEM
    # target_ref: (TILE_N, 1) int32 in VMEM
    # out_ref:    (1, 1) f32 in VMEM (same block for every grid step)
    # total_ref:  (1, 1) f32 VMEM scratch (running sum of per-sample loss)
    # count_ref:  (1, 1) i32 VMEM scratch (running count of valid samples)
    i = pl.program_id(0)

    @pl.when(i == 0)
    def _init():
        total_ref[...] = jnp.zeros_like(total_ref)
        count_ref[...] = jnp.zeros_like(count_ref)

    logits = logits_ref[...].astype(jnp.float32)            # (TILE_N, C) f32
    tgt = target_ref[...]                                    # (TILE_N, 1) i32
    tn, c = logits.shape

    # Row validity: inside the real array (ragged last tile) and not ignored.
    row_ids = jax.lax.broadcasted_iota(jnp.int32, (tn, 1), 0) + i * tn
    valid = jnp.logical_and(row_ids < n_rows, tgt != ignore_label)   # (TILE_N, 1) bool

    # Numerically-stable log-sum-exp over the class axis.
    m = jnp.max(logits, axis=-1, keepdims=True)              # (TILE_N, 1)
    lse = jnp.log(jnp.sum(jnp.exp(logits - m), axis=-1, keepdims=True)) + m

    # Gather the target logit with a where-select (no one-hot multiply).
    class_ids = jax.lax.broadcasted_iota(jnp.int32, (tn, c), 1)
    picked = jnp.sum(jnp.where(class_ids == tgt, logits, 0.0),
                     axis=-1, keepdims=True)                  # (TILE_N, 1)

    # where (not multiply) so inf/NaN in ignored / padded rows cannot leak.
    per_sample = jnp.where(valid, lse - picked, 0.0)          # (TILE_N, 1)

    total_ref[...] += jnp.sum(per_sample, axis=(0, 1), keepdims=True)
    # Per-tile count reduced in f32 (exact: <= TILE_N), accumulated exactly in i32.
    tile_count = jnp.sum(valid.astype(jnp.float32), axis=(0, 1), keepdims=True)
    count_ref[...] += tile_count.astype(jnp.int32)

    @pl.when(i == pl.num_programs(0) - 1)
    def _finalize():
        # Mean over valid samples; 0/0 -> NaN if everything is ignored,
        # matching F.cross_entropy(reduction='mean', ignore_index=-1).
        out_ref[...] = total_ref[...] / count_ref[...].astype(jnp.float32)


def _choose_tile_n(n, c, itemsize):
    # Keep each input block ~<= 2 MiB so (2 double-buffers x inputs + scratch)
    # stays far under scoped VMEM on every generation (incl. v7x's 64 MiB).
    budget_bytes = 2 * 1024 * 1024
    rows = budget_bytes // max(1, c * itemsize)
    rows = max(8, min(rows, 2048))
    if n <= rows:
        return n                      # single tile == full array (always legal)
    return (rows // 8) * 8            # multiple of 8 sublanes


def ppc_loss(contrast_logits, contrast_target, *, ignore_label=-1, tile_n=None):
    """contrast_logits: [N, C] float (any float dtype, passed natively);
    contrast_target: [N] int (-1 = ignore)."""
    n, c = contrast_logits.shape
    itemsize = jnp.dtype(contrast_logits.dtype).itemsize
    if tile_n is None:
        tile_n = _choose_tile_n(n, c, itemsize)
    tile_n = min(tile_n, n)
    if tile_n < n:
        tile_n = max(8, (tile_n // 8) * 8)
    num_tiles = pl.cdiv(n, tile_n)

    target = contrast_target.astype(jnp.int32).reshape(n, 1)

    # Explicit VMEM budget: inputs are double-buffered by the pipeline.
    block_bytes = tile_n * (c * itemsize + 4)
    vmem_limit = int(min(64 * 1024 * 1024,
                         max(16 * 1024 * 1024, 8 * block_bytes)))

    kernel = partial(_ppc_kernel, n_rows=n, ignore_label=ignore_label)

    out = pl.pallas_call(
        kernel,
        grid=(num_tiles,),
        out_shape=jax.ShapeDtypeStruct((1, 1), jnp.float32),
        in_specs=[
            pl.BlockSpec((tile_n, c), lambda i: (i, 0)),   # logits tile
            pl.BlockSpec((tile_n, 1), lambda i: (i, 0)),   # target tile
        ],
        out_specs=pl.BlockSpec((1, 1), lambda i: (0, 0)),  # scalar loss
        scratch_shapes=[
            pltpu.VMEM((1, 1), jnp.float32),               # running total
            pltpu.VMEM((1, 1), jnp.int32),                 # running valid count
        ],
        compiler_params=pltpu.CompilerParams(
            dimension_semantics=("arbitrary",),            # serial reduction axis
            vmem_limit_bytes=vmem_limit,
        ),
    )(contrast_logits, target)
    return out[0, 0]


def ppc_loss_ref(contrast_logits, contrast_target):
    """Pure-JAX reference for correctness check."""
    logits = contrast_logits.astype(jnp.float32)
    tgt = contrast_target.astype(jnp.int32)
    lse = jax.scipy.special.logsumexp(logits, axis=-1)
    picked = jnp.take_along_axis(
        logits, jnp.clip(tgt, 0, logits.shape[1] - 1)[:, None], axis=-1
    )[:, 0]
    valid = (tgt != -1).astype(jnp.float32)
    per = jnp.where(tgt != -1, lse - picked, 0.0)
    return jnp.sum(per) / jnp.sum(valid)


if __name__ == "__main__":
    key = jax.random.PRNGKey(0)
    k1, k2, k3, k4 = jax.random.split(key, 4)

    # Test 1: f32 logits, single tile.
    N, C = 64, 16  # e.g. 64 pixel samples, 16 prototype classes
    contrast_logits = jax.random.normal(k1, (N, C), dtype=jnp.float32)
    contrast_target = jax.random.randint(k2, (N,), -1, C, dtype=jnp.int32)

    loss = jax.block_until_ready(ppc_loss(contrast_logits, contrast_target))
    ref = ppc_loss_ref(contrast_logits, contrast_target)
    assert jnp.allclose(loss, ref, rtol=1e-5, atol=1e-5), (loss, ref)

    # Test 2: bf16 logits passed natively (no wrapper cast), f32 math in-kernel.
    logits_bf16 = contrast_logits.astype(jnp.bfloat16)
    loss_bf16 = jax.block_until_ready(ppc_loss(logits_bf16, contrast_target))
    ref_bf16 = ppc_loss_ref(logits_bf16.astype(jnp.float32), contrast_target)
    assert jnp.allclose(loss_bf16, ref_bf16, rtol=1e-4, atol=1e-4), (loss_bf16, ref_bf16)

    # Test 3: multi-tile grid with a ragged last tile (accumulator + row mask path).
    N2 = 100
    logits2 = jax.random.normal(k3, (N2, C), dtype=jnp.float32)
    target2 = jax.random.randint(k4, (N2,), -1, C, dtype=jnp.int32)
    loss2 = jax.block_until_ready(ppc_loss(logits2, target2, tile_n=32))
    ref2 = ppc_loss_ref(logits2, target2)
    assert jnp.allclose(loss2, ref2, rtol=1e-5, atol=1e-5), (loss2, ref2)

    print("KERNEL_OK")
</pallas_src>

<mosaic_0001>
module attributes {stable_mosaic.version = 11 : i64} {
  func.func @_ppc_kernel(%arg0: i32, %arg1: memref<64x16xf32, #tpu.memory_space<vmem>>, %arg2: memref<64x1xi32, #tpu.memory_space<vmem>>, %arg3: memref<1x1xf32, #tpu.memory_space<vmem>>, %arg4: memref<1x1xf32, #tpu.memory_space<vmem>>, %arg5: memref<1x1xi32, #tpu.memory_space<vmem>>) attributes {dimension_semantics = [#tpu.dimension_semantics<arbitrary>], iteration_bounds = array<i64: 1>, scalar_prefetch = 0 : i64, scratch_operands = 2 : i64, tpu.core_type = #tpu.core_type<tc>, window_params = [{transform_indices = @transform_0, window_bounds = array<i64: 64, 16>}, {transform_indices = @transform_1, window_bounds = array<i64: 64, 1>}, {pipeline_mode = #tpu.pipeline_mode<synchronous>, transform_indices = @transform_2, window_bounds = array<i64: 1, 1>}]} {
    %c0_i32 = arith.constant 0 : i32
    %0 = arith.cmpi eq, %arg0, %c0_i32 : i32
    %1 = arith.extui %0 : i1 to i32
    %c0_i32_0 = arith.constant 0 : i32
    %2 = arith.cmpi ne, %1, %c0_i32_0 : i32
    scf.if %2 {
      %cst_21 = arith.constant 0.000000e+00 : f32
      %55 = vector.broadcast %cst_21 : f32 to vector<1x1xf32>
      %c0_22 = arith.constant 0 : index
      %c0_23 = arith.constant 0 : index
      %56 = vector.load %arg4[%c0_22, %c0_23] : memref<1x1xf32, #tpu.memory_space<vmem>>, vector<1x1xf32>
      tpu.vector_store %arg4[%c0_22, %c0_23], %55 {strides = array<i32>} : memref<1x1xf32, #tpu.memory_space<vmem>>, vector<1x1xf32>,
      %c0_i32_24 = arith.constant 0 : i32
      %57 = vector.broadcast %c0_i32_24 : i32 to vector<1x1xi32>
      %c0_25 = arith.constant 0 : index
      %c0_26 = arith.constant 0 : index
      %58 = vector.load %arg5[%c0_25, %c0_26] : memref<1x1xi32, #tpu.memory_space<vmem>>, vector<1x1xi32>
      tpu.vector_store %arg5[%c0_25, %c0_26], %57 {strides = array<i32>} : memref<1x1xi32, #tpu.memory_space<vmem>>, vector<1x1xi32>,
    } else {
    }
    %c0 = arith.constant 0 : index
    %c0_1 = arith.constant 0 : index
    %3 = vector.load %arg1[%c0, %c0_1] : memref<64x16xf32, #tpu.memory_space<vmem>>, vector<64x16xf32>
    %c0_2 = arith.constant 0 : index
    %c0_3 = arith.constant 0 : index
    %4 = vector.load %arg2[%c0_2, %c0_3] : memref<64x1xi32, #tpu.memory_space<vmem>>, vector<64x1xi32>
    %5 = tpu.iota {dimensions = array<i32: 0>} : vector<64x1xi32>
    %c64_i32 = arith.constant 64 : i32
    %6 = arith.muli %arg0, %c64_i32 : i32
    %7 = vector.broadcast %6 : i32 to vector<64x1xi32>
    %8 = arith.addi %5, %7 : vector<64x1xi32>
    %c64_i32_4 = arith.constant 64 : i32
    %9 = vector.broadcast %c64_i32_4 : i32 to vector<64x1xi32>
    %10 = arith.cmpi slt, %8, %9 : vector<64x1xi32>
    %c-1_i32 = arith.constant -1 : i32
    %11 = vector.broadcast %c-1_i32 : i32 to vector<64x1xi32>
    %12 = arith.cmpi ne, %4, %11 : vector<64x1xi32>
    %13 = arith.andi %10, %12 : vector<64x1xi1>
    %cst = arith.constant dense<0xFF800000> : vector<64xf32>
    %14 = vector.multi_reduction <maximumf>, %3, %cst [1] : vector<64x16xf32> to vector<64xf32>
    %15 = vector.shape_cast %14 : vector<64xf32> to vector<64x1xf32>
    %16 = vector.broadcast %15 : vector<64x1xf32> to vector<64x16xf32>
    %17 = arith.subf %3, %16 : vector<64x16xf32>
    %18 = math.exp %17 : vector<64x16xf32>
    %cst_5 = arith.constant dense<0.000000e+00> : vector<64xf32>
    %19 = vector.multi_reduction <add>, %18, %cst_5 [1] : vector<64x16xf32> to vector<64xf32>
    %20 = vector.shape_cast %19 : vector<64xf32> to vector<64x1xf32>
    %21 = math.log %20 : vector<64x1xf32>
    %22 = arith.addf %21, %15 : vector<64x1xf32>
    %23 = tpu.iota {dimensions = array<i32: 1>} : vector<64x16xi32>
    %24 = vector.broadcast %4 : vector<64x1xi32> to vector<64x16xi32>
    %25 = arith.cmpi eq, %23, %24 : vector<64x16xi32>
    %cst_6 = arith.constant 0.000000e+00 : f32
    %26 = vector.broadcast %cst_6 : f32 to vector<64x16xf32>
    %27 = arith.select %25, %3, %26 : vector<64x16xi1>, vector<64x16xf32>
    %cst_7 = arith.constant dense<0.000000e+00> : vector<64xf32>
    %28 = vector.multi_reduction <add>, %27, %cst_7 [1] : vector<64x16xf32> to vector<64xf32>
    %29 = vector.shape_cast %28 : vector<64xf32> to vector<64x1xf32>
    %30 = arith.subf %22, %29 : vector<64x1xf32>
    %cst_8 = arith.constant 0.000000e+00 : f32
    %31 = vector.broadcast %cst_8 : f32 to vector<64x1xf32>
    %32 = arith.select %13, %30, %31 : vector<64x1xi1>, vector<64x1xf32>
    %c0_9 = arith.constant 0 : index
    %c0_10 = arith.constant 0 : index
    %33 = vector.load %arg4[%c0_9, %c0_10] : memref<1x1xf32, #tpu.memory_space<vmem>>, vector<1x1xf32>
    %34 = vector.shape_cast %32 : vector<64x1xf32> to vector<1x64x1xf32>
    %cst_11 = arith.constant dense<0.000000e+00> : vector<1xf32>
    %35 = vector.multi_reduction <add>, %34, %cst_11 [1, 2] : vector<1x64x1xf32> to vector<1xf32>
    %36 = vector.shape_cast %35 : vector<1xf32> to vector<1x1x1xf32>
    %37 = vector.extract %36[0, 0, 0] : f32 from vector<1x1x1xf32>
    %38 = vector.broadcast %37 : f32 to vector<1x1xf32>
    %39 = arith.addf %33, %38 : vector<1x1xf32>
    %c0_12 = arith.constant 0 : index
    %c0_13 = arith.constant 0 : index
    %40 = vector.load %arg4[%c0_12, %c0_13] : memref<1x1xf32, #tpu.memory_space<vmem>>, vector<1x1xf32>
    tpu.vector_store %arg4[%c0_12, %c0_13], %39 {strides = array<i32>} : memref<1x1xf32, #tpu.memory_space<vmem>>, vector<1x1xf32>,
    %41 = arith.extui %13 : vector<64x1xi1> to vector<64x1xi32>
    %42 = arith.sitofp %41 : vector<64x1xi32> to vector<64x1xf32>
    %43 = vector.shape_cast %42 : vector<64x1xf32> to vector<1x64x1xf32>
    %cst_14 = arith.constant dense<0.000000e+00> : vector<1xf32>
    %44 = vector.multi_reduction <add>, %43, %cst_14 [1, 2] : vector<1x64x1xf32> to vector<1xf32>
    %45 = vector.shape_cast %44 : vector<1xf32> to vector<1x1x1xf32>
    %46 = vector.extract %45[0, 0, 0] : f32 from vector<1x1x1xf32>
    %47 = vector.broadcast %46 : f32 to vector<1x1xf32>
    %c0_15 = arith.constant 0 : index
    %c0_16 = arith.constant 0 : index
    %48 = vector.load %arg5[%c0_15, %c0_16] : memref<1x1xi32, #tpu.memory_space<vmem>>, vector<1x1xi32>
    %49 = arith.fptosi %47 : vector<1x1xf32> to vector<1x1xi32>
    %50 = arith.addi %48, %49 : vector<1x1xi32>
    %c0_17 = arith.constant 0 : index
    %c0_18 = arith.constant 0 : index
    %51 = vector.load %arg5[%c0_17, %c0_18] : memref<1x1xi32, #tpu.memory_space<vmem>>, vector<1x1xi32>
    tpu.vector_store %arg5[%c0_17, %c0_18], %50 {strides = array<i32>} : memref<1x1xi32, #tpu.memory_space<vmem>>, vector<1x1xi32>,
    %c0_i32_19 = arith.constant 0 : i32
    %52 = arith.cmpi eq, %arg0, %c0_i32_19 : i32
    %53 = arith.extui %52 : i1 to i32
    %c0_i32_20 = arith.constant 0 : i32
    %54 = arith.cmpi ne, %53, %c0_i32_20 : i32
    scf.if %54 {
      %c0_21 = arith.constant 0 : index
      %c0_22 = arith.constant 0 : index
      %55 = vector.load %arg4[%c0_21, %c0_22] : memref<1x1xf32, #tpu.memory_space<vmem>>, vector<1x1xf32>
      %c0_23 = arith.constant 0 : index
      %c0_24 = arith.constant 0 : index
      %56 = vector.load %arg5[%c0_23, %c0_24] : memref<1x1xi32, #tpu.memory_space<vmem>>, vector<1x1xi32>
      %57 = arith.sitofp %56 : vector<1x1xi32> to vector<1x1xf32>
      %58 = arith.divf %55, %57 : vector<1x1xf32>
      %c0_25 = arith.constant 0 : index
      %c0_26 = arith.constant 0 : index
      %59 = vector.load %arg3[%c0_25, %c0_26] : memref<1x1xf32, #tpu.memory_space<vmem>>, vector<1x1xf32>
      tpu.vector_store %arg3[%c0_25, %c0_26], %58 {strides = array<i32>} : memref<1x1xf32, #tpu.memory_space<vmem>>, vector<1x1xf32>,
    } else {
    }
    return
  }
  func.func @transform_0(%arg0: i32) -> (i32, i32) {
    %c0_i32 = arith.constant 0 : i32
    %c0_i32_0 = arith.constant 0 : i32
    return %arg0, %c0_i32 : i32, i32
  }
  func.func @transform_1(%arg0: i32) -> (i32, i32) {
    %c0_i32 = arith.constant 0 : i32
    %c0_i32_0 = arith.constant 0 : i32
    return %arg0, %c0_i32 : i32, i32
  }
  func.func @transform_2(%arg0: i32) -> (i32, i32) {
    %c0_i32 = arith.constant 0 : i32
    %c0_i32_0 = arith.constant 0 : i32
    %c0_i32_1 = arith.constant 0 : i32
    return %c0_i32, %c0_i32_0 : i32, i32
  }
}

</mosaic_0001>

<bundles_post_ra>
// kernel: tpu_custom_call.1
= control target key start
LH: loop header
LB: loop body
LE: loop exit
PB: predicated region body
PF: predicated region fallthrough
CT: control target
= control target key end

     0   :  { %vm78_vm0 = vcmask 130048   ;;  %vm16_vm1 = vcmask 0   ;;  %v432_v6 = vmov 0   ;;  %v433_v11 = vmov 0.0   ;;  %s700_s0 = inlined_call_operand.vmem [shape: f32[64,16], index: 0, kind: input, shape index: {}]   ;;  %s701_s1 = inlined_call_operand.vmem [shape: s32[64,1], index: 1, kind: input, shape index: {}]   ;;  %s702_s2 = inlined_call_operand.hbm [shape: f32[1,1], index: 2, kind: output, shape index: {}]  }
   0x1   :  { %v453_v0 = vld [vmem:[%s700_s0 + $0x10] sm:$0xff]  ;;  %v458_v1 = vld [vmem:[%s700_s0] sm:$0xff]  ;;  %v463_v2 = vld [vmem:[%s700_s0 + $0x18] sm:$0xff]  ;;  %373 = vset.pattern.permute.xlu1 %v432_v6  ;;  %18 = vst.msk [vmem:[#allocation3] sm:$0x1] %vm16_vm1, %v432_v6  ;;  %372 = vset.pattern.permute.xlu0 %v432_v6 }
   0x2   :  { %v85_v3 = vsel %vm78_vm0, %v453_v0, -inf  ;;  %v79_v4 = vsel %vm78_vm0, %v458_v1, -inf  ;;  %v472_v5 = vld [vmem:[%s700_s0 + $0x8] sm:$0xff]  ;;  %v88_v7 = vsel %vm78_vm0, %v463_v2, -inf  ;;  %v487_v10 = vld [vmem:[%s700_s0 + $0x20] sm:$0xff] }
   0x3   :  { %86 = vmax.xlane.f32.xlu1 %v85_v3  ;;  %80 = vmax.xlane.f32.xlu0 %v79_v4  ;;  %v82_v8 = vsel %vm78_vm0, %v472_v5, -inf  ;;  %v482_v9 = vld [vmem:[%s700_s0 + $0x28] sm:$0xff]  ;;  %17 = vst.msk [vmem:[#allocation2] sm:$0x1] %vm16_vm1, %v433_v11 }
   0x7   :  { %89 = vmax.xlane.f32.xlu1 %v88_v7  ;;  %83 = vmax.xlane.f32.xlu0 %v82_v8 }
   0x8   :  { %7 = vsyncpa [#allocation5], 0  ;;  %v94_v12 = vsel %vm78_vm0, %v482_v9, -inf  ;;  %v91_v13 = vsel %vm78_vm0, %v487_v10, -inf  ;;  %v498_v14 = vld [vmem:[%s700_s0 + $0x38] sm:$0xff]  ;;  %v503_v15 = vld [vmem:[%s700_s0 + $0x30] sm:$0xff]  ;;  %v175_v54 = vlaneseq }
   0x9   :  { %v100_v16 = vsel %vm78_vm0, %v498_v14, -inf  ;;  %v97_v17 = vsel %vm78_vm0, %v503_v15, -inf  ;;  %v512_v18 = vld [vmem:[%s701_s1 + $0x8] sm:$0xff]  ;;  %v518_v19 = vld [vmem:[%s701_s1 + $0x10] sm:$0xff]  ;;  %v523_v20 = vld [vmem:[%s701_s1] sm:$0xff]  ;;  %vm258_vm11 = vcmask 7168  }
   0xa   :  { %v529_v21 = vld [vmem:[%s701_s1 + $0x18] sm:$0xff]  ;;  %v536_v22 = vld [vmem:[%s701_s1 + $0x20] sm:$0xff]  ;;  %v542_v23 = vld [vmem:[%s701_s1 + $0x28] sm:$0xff]  ;;  %v176_v61 = vand.u32 127, %v175_v54  ;;  %vm63_vm8 = vcmp.ne.s32.totalorder %v512_v18, 4294967295  ;;  %vm62_vm9 = vcmp.ne.s32.totalorder %v523_v20, 4294967295 }
   0xb   :  { %95 = vmax.xlane.f32.xlu1 %v94_v12  ;;  %92 = vmax.xlane.f32.xlu0 %v91_v13  ;;  %v548_v24 = vld [vmem:[%s701_s1 + $0x30] sm:$0xff]  ;;  %v554_v25 = vld [vmem:[%s701_s1 + $0x38] sm:$0xff]  ;;  %vm64_vm13 = vcmp.ne.s32.totalorder %v518_v19, 4294967295  ;;  %vm65_vm14 = vcmp.ne.s32.totalorder %v529_v21, 4294967295  ;;  %vm66_vm15 = vcmp.ne.s32.totalorder %v536_v22, 4294967295  ;;  %s434_s13 = smov [#allocation4]  }
   0xc   :  { %s347_s14 = sshll.u32 %s434_s13, 4  ;;  %s348_s14 = int_to_ptr.vmem [resolvable:$true] %s347_s14 }
   0xd   :  { %s408_s15 = scalar_lea.vmem %s348_s14, 16  ;;  %s412_s16 = scalar_lea.vmem %s348_s14, 32 }
   0xe   :  { %p409_p0 = scmp.ne.s32.totalorder %s348_s14, %s408_s15  ;;  %p413_p1 = scmp.lt.s32.totalorder %s348_s14, %s348_s14 }
   0xf   :  { %101 = vmax.xlane.f32.xlu1 %v100_v16  ;;  %98 = vmax.xlane.f32.xlu0 %v97_v17  ;;  %p414_p2 = scmp.lt.s32.totalorder %s412_s16, %s408_s15 }
  0x11   :  { %p415_p3 = por %p414_p2, %p413_p1 }
  0x13   :  { %p416_p4 = pnand %p415_p3, %p409_p0 }
  0x20   :  { %181 = vperm.xlu1 %373, %v512_v18  }
  0x24   :  { %184 = vperm.xlu1 %373, %v518_v19  }
  0x25   :  { %178 = vperm.xlu0 %372, %v523_v20  }
  0x28   :  { %187 = vperm.xlu1 %373, %v529_v21  }
  0x2c   :  { %190 = vperm.xlu1 %373, %v536_v22  }
  0x30   :  { %193 = vperm.xlu1 %373, %v542_v23  }
  0x34   :  { %196 = vperm.xlu1 %373, %v548_v24  }
  0x38   :  { %199 = vperm.xlu1 %373, %v554_v25  }
  0x90   :  { %v557_v26 = vpop.xlane.xlu1 %86  ;;  %v559_v27 = vpop.xlane.xlu0 %80 }
  0x91   :  { %v103_v28 = vsub.f32 %v458_v1, %v559_v27  ;;  %v105_v30 = vsub.f32 %v453_v0, %v557_v26 }
  0x93   :  { %v111_v29 = vmul.f32 1.442695, %v103_v28  ;;  %v115_v37 = vmul.f32 1.442695, %v105_v30 }
  0x94   :  { %v565_v31 = vpop.xlane.xlu1 %89  ;;  %v567_v32 = vpop.xlane.xlu0 %83 }
  0x95   :  { %v106_v33 = vsub.f32 %v463_v2, %v565_v31  ;;  %v104_v34 = vsub.f32 %v472_v5, %v567_v32  ;;  %374 = vpow2.f32 %v111_v29 }
  0x97   :  { %v117_v35 = vmul.f32 1.442695, %v106_v33  ;;  %v113_v36 = vmul.f32 1.442695, %v104_v34 }
  0x98   :  { %v573_v38 = vpop.xlane.xlu1 %95  ;;  %v575_v39 = vpop.xlane.xlu0 %92 }
  0x99   :  { %376 = vpow2.f32 %v117_v35  ;;  %v108_v40 = vsub.f32 %v482_v9, %v573_v38  ;;  %v107_v41 = vsub.f32 %v487_v10, %v575_v39 }
  0x9a   :  { %378 = vpow2.f32 %v113_v36 }
  0x9b   :  { %v121_v42 = vmul.f32 1.442695, %v108_v40  ;;  %v119_v43 = vmul.f32 1.442695, %v107_v41  ;;  %380 = vpow2.f32 %v115_v37 }
  0x9c   :  { %v581_v44 = vpop.xlane.xlu1 %101  ;;  %v583_v45 = vpop.xlane.xlu0 %98 }
  0x9d   :  { %382 = vpow2.f32 %v121_v42  ;;  %v110_v46 = vsub.f32 %v498_v14, %v581_v44  ;;  %v109_v47 = vsub.f32 %v503_v15, %v583_v45 }
  0x9e   :  { %384 = vpow2.f32 %v119_v43  ;;  %v355_v43 = vsel %vm62_vm9, 1.0, %v433_v11 }
  0x9f   :  { %v125_v48 = vmul.f32 1.442695, %v110_v46  ;;  %v123_v49 = vmul.f32 1.442695, %v109_v47  ;;  %v375_v50 = vpop.eup %374 }
  0xa0   :  { %v182_v51 = vpop.permute.xlu1 %181  ;;  %v127_v52 = vsel %vm78_vm0, %v375_v50, 0.0 }
  0xa1   :  { %386 = vpow2.f32 %v125_v48  ;;  %128 = vadd.xlane.f32.xlu1 %v127_v52  ;;  %vm202_vm2 = vcmp.eq.s32.totalorder %v176_v61, %v182_v51 }
  0xa2   :  { %388 = vpow2.f32 %v123_v49  ;;  %v210_v17 = vsel %vm202_vm2, %v472_v5, 0.0  ;;  %v357_v49 = vsel %vm64_vm13, 1.0, %v433_v11  ;;  %vm67_vm2 = vcmp.ne.s32.totalorder %v542_v23, 4294967295 }
  0xa3   :  { %v377_v53 = vpop.eup %376  ;;  %v220_v33 = vsel %vm78_vm0, %v210_v17, 0.0  ;;  %v306_v52 = vsel %vm258_vm11, %v357_v49, 0.0 }
  0xa4   :  { %v379_v55 = vpop.eup %378  ;;  %v185_v56 = vpop.permute.xlu1 %184  ;;  %v136_v57 = vsel %vm78_vm0, %v377_v53, 0.0  ;;  %v358_v53 = vsel %vm65_vm14, 1.0, %v433_v11 }
  0xa5   :  { %v130_v58 = vsel %vm78_vm0, %v379_v55, 0.0  ;;  %v381_v59 = vpop.eup %380  ;;  %137 = vadd.xlane.f32.xlu1 %v136_v57  ;;  %v179_v6 = vpop.permute.xlu0 %178  ;;  %vm203_vm5 = vcmp.eq.s32.totalorder %v176_v61, %v185_v56  ;;  %v308_v55 = vsel %vm258_vm11, %v358_v53, 0.0  ;;  %v360_v56 = vsel %vm67_vm2, 1.0, %v433_v11 }
  0xa6   :  { %131 = vadd.xlane.f32.xlu0 %v130_v58  ;;  %v133_v4 = vsel %vm78_vm0, %v381_v59, 0.0  ;;  %vm201_vm3 = vcmp.eq.s32.totalorder %v176_v61, %v179_v6  ;;  %v211_v40 = vsel %vm203_vm5, %v453_v0, 0.0  ;;  %v356_v0 = vsel %vm63_vm8, 1.0, %v433_v11 }
  0xa7   :  { %v383_v60 = vpop.eup %382  ;;  %v209_v30 = vsel %vm201_vm3, %v458_v1, 0.0  ;;  %v223_v41 = vsel %vm78_vm0, %v211_v40, 0.0  ;;  %v304_v48 = vsel %vm258_vm11, %v356_v0, 0.0  ;;  %v312_v59 = vsel %vm258_vm11, %v360_v56, 0.0 }
  0xa8   :  { %v385_v62 = vpop.eup %384  ;;  %v188_v63 = vpop.permute.xlu1 %187  ;;  %v142_v3 = vsel %vm78_vm0, %v383_v60, 0.0  ;;  %v217_v35 = vsel %vm78_vm0, %v209_v30, 0.0  ;;  %vm69_vm3 = vcmp.ne.s32.totalorder %v554_v25, 4294967295 }
  0xa9   :  { %143 = vadd.xlane.f32.xlu1 %v142_v3  ;;  %v139_v8 = vsel %vm78_vm0, %v385_v62, 0.0  ;;  %vm204_vm4 = vcmp.eq.s32.totalorder %v176_v61, %v188_v63  ;;  %v362_v3 = vsel %vm69_vm3, 1.0, %v433_v11 }
  0xaa   :  { %134 = vadd.xlane.f32.xlu0 %v133_v4  ;;  %v212_v34 = vsel %vm204_vm4, %v463_v2, 0.0  ;;  %v316_v6 = vsel %vm258_vm11, %v362_v3, 0.0 }
  0xab   :  { %v387_v7 = vpop.eup %386  ;;  %v226_v37 = vsel %vm78_vm0, %v212_v34, 0.0 }
  0xac   :  { %v389_v12 = vpop.eup %388  ;;  %v191_v13 = vpop.permute.xlu1 %190  ;;  %v148_v16 = vsel %vm78_vm0, %v387_v7, 0.0 }
  0xad   :  { %149 = vadd.xlane.f32.xlu1 %v148_v16  ;;  %v145_v28 = vsel %vm78_vm0, %v389_v12, 0.0  ;;  %vm205_vm7 = vcmp.eq.s32.totalorder %v176_v61, %v191_v13 }
  0xae   :  { %140 = vadd.xlane.f32.xlu0 %v139_v8 }
  0xb0   :  { %v194_v29 = vpop.permute.xlu1 %193 }
  0xb1   :  { %221 = vadd.xlane.f32.xlu1 %v220_v33  ;;  %vm206_vm6 = vcmp.eq.s32.totalorder %v176_v61, %v194_v29 }
  0xb2   :  { %146 = vadd.xlane.f32.xlu0 %v145_v28  ;;  %v214_v5 = vsel %vm206_vm6, %v482_v9, 0.0  ;;  %v213_v9 = vsel %vm205_vm7, %v487_v10, 0.0 }
  0xb3   :  { %v232_v2 = vsel %vm78_vm0, %v214_v5, 0.0  ;;  %v229_v47 = vsel %vm78_vm0, %v213_v9, 0.0 }
  0xb4   :  { %v197_v36 = vpop.permute.xlu1 %196 }
  0xb5   :  { %227 = vadd.xlane.f32.xlu1 %v226_v37  ;;  %vm207_vm12 = vcmp.eq.s32.totalorder %v176_v61, %v197_v36 }
  0xb6   :  { %218 = vadd.xlane.f32.xlu0 %v217_v35  ;;  %v215_v10 = vsel %vm207_vm12, %v503_v15, 0.0  ;;  %v359_v15 = vsel %vm66_vm15, 1.0, %v433_v11 }
  0xb7   :  { %v235_v51 = vsel %vm78_vm0, %v215_v10, 0.0  ;;  %v310_v57 = vsel %vm258_vm11, %v359_v15, 0.0 }
  0xb8   :  { %v200_v1 = vpop.permute.xlu1 %199 }
  0xb9   :  { %vm208_vm10 = vcmp.eq.s32.totalorder %v176_v61, %v200_v1  ;;  %233 = vadd.xlane.f32.xlu1 %v232_v2 }
  0xba   :  { %224 = vadd.xlane.f32.xlu0 %v223_v41  ;;  %v216_v42 = vsel %vm208_vm10, %v498_v14, 0.0  ;;  %v303_v14 = vsel %vm258_vm11, %v355_v43, 0.0 }
  0xbb   :  { %v238_v46 = vsel %vm78_vm0, %v216_v42, 0.0  ;;  %v305_v50 = vadd.f32 %v304_v48, %v303_v14  ;;  %vm68_vm0 = vcmp.ne.s32.totalorder %v548_v24, 4294967295 }
  0xbc   :  { %v361_v60 = vsel %vm68_vm0, 1.0, %v433_v11 }
  0xbd   :  { %239 = vadd.xlane.f32.xlu1 %v238_v46  ;;  %v307_v54 = vadd.f32 %v306_v52, %v305_v50  ;;  %v314_v63 = vsel %vm258_vm11, %v361_v60, 0.0 }
  0xbe   :  { %230 = vadd.xlane.f32.xlu0 %v229_v47 }
  0xbf   :  { %v309_v58 = vadd.f32 %v308_v55, %v307_v54 }
  0xc1   :  { %v311_v61 = vadd.f32 %v310_v57, %v309_v58 }
  0xc2   :  { %236 = vadd.xlane.f32.xlu0 %v235_v51 }
  0xc3   :  { %v313_v62 = vadd.f32 %v312_v59, %v311_v61 }
  0xc5   :  { %v315_v4 = vadd.f32 %v314_v63, %v313_v62 }
  0xc7   :  { %v317_v7 = vadd.f32 %v316_v6, %v315_v4 }
  0xc9   :  { %318 = vadd.xlane.f32.xlu1 %v317_v7 }
 0x12e   :  { %v129_v8 = vpop.xlane.xlu1 %128 }
 0x12f   :  { %390 = vlog2.f32 %v129_v8 }
 0x132   :  { %v138_v12 = vpop.xlane.xlu1 %137 }
 0x133   :  { %v132_v13 = vpop.xlane.xlu0 %131  ;;  %392 = vlog2.f32 %v138_v12 }
 0x134   :  { %394 = vlog2.f32 %v132_v13 }
 0x136   :  { %v144_v16 = vpop.xlane.xlu1 %143 }
 0x137   :  { %v135_v17 = vpop.xlane.xlu0 %134  ;;  %396 = vlog2.f32 %v144_v16 }
 0x138   :  { %398 = vlog2.f32 %v135_v17 }
 0x139   :  { %v391_v28 = vpop.eup %390 }
 0x13a   :  { %v150_v29 = vpop.xlane.xlu1 %149  ;;  %v152_v33 = vmul.f32 0.6931472, %v391_v28 }
 0x13b   :  { %v141_v30 = vpop.xlane.xlu0 %140  ;;  %400 = vlog2.f32 %v150_v29 }
 0x13c   :  { %402 = vlog2.f32 %v141_v30  ;;  %v167_v41 = vadd.f32 %v152_v33, %v559_v27 }
 0x13d   :  { %v393_v11 = vpop.eup %392 }
 0x13e   :  { %v395_v34 = vpop.eup %394  ;;  %v158_v35 = vmul.f32 0.6931472, %v393_v11  ;;  %v222_v36 = vpop.xlane.xlu1 %221 }
 0x13f   :  { %v147_v37 = vpop.xlane.xlu0 %146  ;;  %v154_v5 = vmul.f32 0.6931472, %v395_v34 }
 0x140   :  { %404 = vlog2.f32 %v147_v37  ;;  %v170_v40 = vadd.f32 %v158_v35, %v565_v31 }
 0x141   :  { %v397_v1 = vpop.eup %396  ;;  %v168_v2 = vadd.f32 %v154_v5, %v567_v32 }
 0x142   :  { %v399_v42 = vpop.eup %398  ;;  %v162_v9 = vmul.f32 0.6931472, %v397_v1  ;;  %v228_v0 = vpop.xlane.xlu1 %227 }
 0x143   :  { %v219_v43 = vpop.xlane.xlu0 %218  ;;  %v156_v46 = vmul.f32 0.6931472, %v399_v42  ;;  %v242_v47 = vsub.f32 %v168_v2, %v222_v36  ;;  %v244_v14 = vsub.f32 %v170_v40, %v228_v0  ;;  %v257_v0 = vld [vmem:[#allocation2] sm:$0x1] }
 0x144   :  { %v241_v48 = vsub.f32 %v167_v41, %v219_v43  ;;  %v172_v50 = vadd.f32 %v162_v9, %v573_v38 }
 0x145   :  { %v401_v10 = vpop.eup %400  ;;  %v250_v49 = vsel %vm63_vm8, %v242_v47, 0.0  ;;  %v169_v32 = vadd.f32 %v156_v46, %v557_v26  ;;  %v252_v18 = vsel %vm65_vm14, %v244_v14, 0.0  ;;  %v328_v14 = vld [vmem:[#allocation3] sm:$0x1] }
 0x146   :  { %v249_v31 = vsel %vm62_vm9, %v241_v48, 0.0  ;;  %v403_v27 = vpop.eup %402  ;;  %v166_v51 = vmul.f32 0.6931472, %v401_v10  ;;  %v260_v52 = vsel %vm258_vm11, %v250_v49, 0.0  ;;  %v234_v15 = vpop.xlane.xlu1 %233  ;;  %v264_v21 = vsel %vm258_vm11, %v252_v18, 0.0 }
 0x147   :  { %v259_v53 = vsel %vm258_vm11, %v249_v31, 0.0  ;;  %v225_v54 = vpop.xlane.xlu0 %224  ;;  %v160_v55 = vmul.f32 0.6931472, %v403_v27  ;;  %v246_v58 = vsub.f32 %v172_v50, %v234_v15 }
 0x148   :  { %v243_v56 = vsub.f32 %v169_v32, %v225_v54  ;;  %v261_v57 = vadd.f32 %v260_v52, %v259_v53  ;;  %v174_v26 = vadd.f32 %v166_v51, %v581_v44 }
 0x149   :  { %v171_v59 = vadd.f32 %v160_v55, %v575_v39  ;;  %v254_v7 = vsel %vm67_vm2, %v246_v58, 0.0 }
 0x14a   :  { %v405_v20 = vpop.eup %404  ;;  %v251_v38 = vsel %vm64_vm13, %v243_v56, 0.0  ;;  %v240_v62 = vpop.xlane.xlu1 %239  ;;  %v268_v17 = vsel %vm258_vm11, %v254_v7, 0.0 }
 0x14b   :  { %v164_v60 = vmul.f32 0.6931472, %v405_v20  ;;  %v262_v61 = vsel %vm258_vm11, %v251_v38, 0.0  ;;  %v231_v63 = vpop.xlane.xlu0 %230  ;;  %v248_v19 = vsub.f32 %v174_v26, %v240_v62 }
 0x14c   :  { %v263_v3 = vadd.f32 %v262_v61, %v261_v57  ;;  %v245_v4 = vsub.f32 %v171_v59, %v231_v63 }
 0x14d   :  { %v173_v6 = vadd.f32 %v164_v60, %v583_v45  ;;  %v256_v28 = vsel %vm69_vm3, %v248_v19, 0.0 }
 0x14e   :  { %v265_v8 = vadd.f32 %v264_v21, %v263_v3  ;;  %v253_v44 = vsel %vm66_vm15, %v245_v4, 0.0  ;;  %v272_v22 = vsel %vm258_vm11, %v256_v28, 0.0 }
 0x14f   :  { %v266_v39 = vsel %vm258_vm11, %v253_v44, 0.0  ;;  %v237_v12 = vpop.xlane.xlu0 %236 }
 0x150   :  { %v267_v13 = vadd.f32 %v266_v39, %v265_v8  ;;  %v247_v16 = vsub.f32 %v173_v6, %v237_v12 }
 0x152   :  { %v255_v45 = vsel %vm68_vm0, %v247_v16, 0.0  ;;  %v269_v23 = vadd.f32 %v268_v17, %v267_v13 }
 0x153   :  { %v270_v29 = vsel %vm258_vm11, %v255_v45, 0.0 }
 0x154   :  { %v271_v30 = vadd.f32 %v270_v29, %v269_v23 }
 0x156   :  { %v273_v11 = vadd.f32 %v272_v22, %v271_v30  ;;  %v319_v33 = vpop.xlane.xlu1 %318 }
 0x157   :  { %v320_v34 = vrot.slane %v319_v33, 4 }
 0x158   :  { %274 = vadd.xlane.f32.xlu0 %v273_v11 }
 0x159   :  { %v321_v35 = vadd.f32 %v320_v34, %v319_v33 }
 0x15b   :  { %v322_v36 = vrot.slane %v321_v35, 2 }
 0x15d   :  { %v323_v25 = vadd.f32 %v322_v36, %v321_v35 }
 0x15f   :  { %v324_v24 = vrot.slane %v323_v25, 1 }
 0x161   :  { %v325_v9 = vadd.f32 %v324_v24, %v323_v25 }
 0x1e5   :  { %v275_v37 = vpop.xlane.xlu0 %274 }
 0x1e6   :  { %v276_v5 = vrot.slane %v275_v37, 4 }
 0x1e8   :  { %v277_v40 = vadd.f32 %v276_v5, %v275_v37 }
 0x1ea   :  { %v278_v1 = vrot.slane %v277_v40, 2 }
 0x1ec   :  { %v279_v2 = vadd.f32 %v278_v1, %v277_v40 }
 0x1ee   :  { %v280_v41 = vrot.slane %v279_v2, 1 }
 0x1f0   :  { %v281_v42 = vadd.f32 %v280_v41, %v279_v2 }
 0x1f2   :  { %363 = vpush %v281_v42 }
 0x1f3   :  { %365 = vpush %v325_v9 }
 0x223   :  { %s364_s1 = spop %363 }
 0x224   :  { %v283_v43 = vstv %s364_s1  ;;  %s366_s12 = spop %365 }
 0x225   :  { %v284_v46 = vadd.f32 %v283_v43, %v257_v0  ;;  %v327_v47 = vstv %s366_s12 }
 0x226   :  { %v367_v48 = vtrunc.f32 %v327_v47 }
 0x227   :  { %286 = vst.msk [vmem:[#allocation2] sm:$0x1] %vm16_vm1, %v284_v46 }
 0x228   :  { %v368_v10 = vcvt.f32.s32 %v367_v48 }
 0x22a   :  { %v330_v49 = vadd.s32 %v368_v10, %v328_v14 }
 0x22c   :  { %331 = vst.msk [vmem:[#allocation3] sm:$0x1] %vm16_vm1, %v330_v49 }
 0x22e   :  { %v335_v27 = vld [vmem:[#allocation2] sm:$0x1] }
 0x233   :  { %v336_v31 = vld [vmem:[#allocation3] sm:$0x1] }
 0x234   :  { %v337_v50 = vcvt.s32.f32 %v336_v31 }
 0x236   :  { %406 = vrcp.f32 %v337_v50 }
 0x240   :  { %v407_v32 = vpop.eup %406 }
 0x241   :  { %v339_v51 = vmul.f32 %v407_v32, %v335_v27 }
 0x243   :  { %340 = vst.msk [vmem:[#allocation4] sm:$0x1] %vm16_vm1, %v339_v51 }
 0x244   :  { %419 = shalt.err (!%p416_p4)
}
 0x245   :  { %s420_s19 = scalar_lea.hbm %s702_s2, 16 }
 0x246   :  { %p421_p5 = scmp.ne.s32.totalorder %s702_s2, %s420_s19  ;;  %p424_p6 = scmp.lt.u32.totalorder %s420_s19, %s702_s2 }
 0x248   :  { %p426_p7 = pnand %p424_p6, %p421_p5 }
 0x24a   :  { %429 = shalt.err (!%p426_p7)
}
 0x24b   :  { %350 = dma.vmem_to_hbm [thread:$0]  %s348_s14, 16, %s702_s2, [#allocation5]  }
 0x24c   :  { %430 = dma.done.wait [#allocation5], 16  }
 0x24d   :  { %431 = vsyncadd [#allocation5], 4294967280 }
 0x24e   :  { %354 = vsyncpa [#allocation5], 1 }

</bundles_post_ra>
